<compile_context>
chip_gen: v7x
topology: tpu7x:2x2x1
jax: 0.10.0
libtpu: 0.0.40
codegen_flags: <defaults>
</compile_context>

<pallas_src>
import jax
import jax.numpy as jnp
from jax.experimental import pallas as pl
from jax.experimental.pallas import tpu as pltpu

IN_F = 5
HID_F = 10
OUT_F = 2


def fused_mlp_kernel(w_ref, b_ref, x_ref, o_ref):
    """w_ref: (IN_F, OUT_F) f32, SMEM  (fused W1 @ W2, resident)
       b_ref: (1, OUT_F)    f32, SMEM  (fused b1 @ W2 + b2, resident)
       x_ref: (IN_F, TILE_B) f32, VMEM (batch on the lane axis)
       o_ref: (OUT_F, TILE_B) f32, VMEM
    """
    for j in range(OUT_F):                    # 2 output features (unrolled)
        acc = w_ref[0, j] * x_ref[0:1, :]     # (1, TILE_B) on the VPU
        for k in range(1, IN_F):              # 4 more scalar*vector mul-adds
            acc = acc + w_ref[k, j] * x_ref[k:k + 1, :]
        acc = acc + b_ref[0, j]               # scalar bias broadcast
        o_ref[j:j + 1, :] = acc.astype(o_ref.dtype)


def _round_up(n, m):
    return (n + m - 1) // m * m


def mlp_forward(x, w1, b1, w2, b2, *, tile_b=2048):
    """x: (B, 5); w1: (5, 10); b1: (1, 10); w2: (10, 2); b2: (1, 2).
    Returns (B, 2) == fc2(fc1(x))."""
    B = x.shape[0]
    out_dtype = x.dtype

    # ---- algebraic fusion of the two affine layers (tiny, done outside) ----
    w = w1.astype(jnp.float32) @ w2.astype(jnp.float32)              # (5, 2)
    b = b1.astype(jnp.float32) @ w2.astype(jnp.float32) + b2.astype(jnp.float32)  # (1, 2)

    # ---- lane-dense layout: batch on the 128-wide lane axis, tiled grid ----
    b_padded = _round_up(max(B, 1), 128)
    tile = min(_round_up(tile_b, 128), b_padded)
    b_padded = _round_up(b_padded, tile)
    n_tiles = b_padded // tile

    x_t = jnp.pad(x.astype(jnp.float32), ((0, b_padded - B), (0, 0))).T  # (5, Bp)

    y_t = pl.pallas_call(
        fused_mlp_kernel,
        out_shape=jax.ShapeDtypeStruct((OUT_F, b_padded), jnp.float32),
        grid=(n_tiles,),
        in_specs=[
            pl.BlockSpec(memory_space=pltpu.MemorySpace.SMEM),   # fused W (resident)
            pl.BlockSpec(memory_space=pltpu.MemorySpace.SMEM),   # fused b (resident)
            pl.BlockSpec((IN_F, tile), lambda i: (0, i)),        # x tile (pipelined)
        ],
        out_specs=pl.BlockSpec((OUT_F, tile), lambda i: (0, i)),
        compiler_params=pltpu.CompilerParams(
            dimension_semantics=("parallel",)),                  # megacore on v7x
    )(w, b, x_t)

    return y_t.T[:B].astype(out_dtype)                           # (B, 2)


def init_params(key):
    """Deterministic init mimicking PyTorch's default Linear init
    (uniform(-1/sqrt(fan_in), 1/sqrt(fan_in))); weights stored (in, out)."""
    k1, k2, k3, k4 = jax.random.split(key, 4)
    bound1 = 1.0 / jnp.sqrt(IN_F)
    bound2 = 1.0 / jnp.sqrt(HID_F)
    w1 = jax.random.uniform(k1, (IN_F, HID_F), jnp.float32, -bound1, bound1)
    b1 = jax.random.uniform(k2, (1, HID_F), jnp.float32, -bound1, bound1)
    w2 = jax.random.uniform(k3, (HID_F, OUT_F), jnp.float32, -bound2, bound2)
    b2 = jax.random.uniform(k4, (1, OUT_F), jnp.float32, -bound2, bound2)
    return w1, b1, w2, b2


if __name__ == "__main__":
    key = jax.random.PRNGKey(0)
    k_x, k_p = jax.random.split(key)

    # Small but representative batch; tile_b=128 exercises the multi-step
    # batch grid + padding path (B=300 -> padded to 384 -> 3 grid steps).
    B = 300
    x = jax.random.normal(k_x, (B, IN_F), dtype=jnp.float32)
    w1, b1, w2, b2 = init_params(k_p)

    out = mlp_forward(x, w1, b1, w2, b2, tile_b=128)
    out = jax.block_until_ready(out)

    # Pure-JAX reference of the original two-layer module.
    ref = (x @ w1 + b1) @ w2 + b2
    assert out.shape == (B, OUT_F)
    assert jnp.allclose(out, ref, atol=1e-5, rtol=1e-5), \
        float(jnp.max(jnp.abs(out - ref)))

    print("KERNEL_OK")
</pallas_src>

<mosaic_0001>
module attributes {stable_mosaic.version = 11 : i64} {
  func.func @fused_mlp_kernel(%arg0: i32, %arg1: memref<5x2xf32, #tpu.memory_space<smem>>, %arg2: memref<1x2xf32, #tpu.memory_space<smem>>, %arg3: memref<5x128xf32, #tpu.memory_space<vmem>>, %arg4: memref<2x128xf32, #tpu.memory_space<vmem>>) attributes {dimension_semantics = [#tpu.dimension_semantics<parallel>], iteration_bounds = array<i64: 3>, scalar_prefetch = 0 : i64, scratch_operands = 0 : i64, tpu.core_type = #tpu.core_type<tc>, window_params = [{transform_indices = @transform_0, window_bounds = array<i64: 5, 2>}, {transform_indices = @transform_1, window_bounds = array<i64: 1, 2>}, {transform_indices = @transform_2, window_bounds = array<i64: 5, 128>}, {transform_indices = @transform_3, window_bounds = array<i64: 2, 128>}]} {
    %c0 = arith.constant 0 : index
    %c0_0 = arith.constant 0 : index
    %0 = memref.load %arg1[%c0, %c0_0] : memref<5x2xf32, #tpu.memory_space<smem>>
    %c0_1 = arith.constant 0 : index
    %c0_2 = arith.constant 0 : index
    %1 = vector.load %arg3[%c0_1, %c0_2] : memref<5x128xf32, #tpu.memory_space<vmem>>, vector<1x128xf32>
    %2 = vector.broadcast %0 : f32 to vector<1x128xf32>
    %3 = arith.mulf %2, %1 : vector<1x128xf32>
    %c1 = arith.constant 1 : index
    %c0_3 = arith.constant 0 : index
    %4 = memref.load %arg1[%c1, %c0_3] : memref<5x2xf32, #tpu.memory_space<smem>>
    %c1_4 = arith.constant 1 : index
    %c0_5 = arith.constant 0 : index
    %5 = vector.load %arg3[%c1_4, %c0_5] : memref<5x128xf32, #tpu.memory_space<vmem>>, vector<1x128xf32>
    %6 = vector.broadcast %4 : f32 to vector<1x128xf32>
    %7 = arith.mulf %6, %5 : vector<1x128xf32>
    %8 = arith.addf %3, %7 : vector<1x128xf32>
    %c2 = arith.constant 2 : index
    %c0_6 = arith.constant 0 : index
    %9 = memref.load %arg1[%c2, %c0_6] : memref<5x2xf32, #tpu.memory_space<smem>>
    %c2_7 = arith.constant 2 : index
    %c0_8 = arith.constant 0 : index
    %10 = vector.load %arg3[%c2_7, %c0_8] : memref<5x128xf32, #tpu.memory_space<vmem>>, vector<1x128xf32>
    %11 = vector.broadcast %9 : f32 to vector<1x128xf32>
    %12 = arith.mulf %11, %10 : vector<1x128xf32>
    %13 = arith.addf %8, %12 : vector<1x128xf32>
    %c3 = arith.constant 3 : index
    %c0_9 = arith.constant 0 : index
    %14 = memref.load %arg1[%c3, %c0_9] : memref<5x2xf32, #tpu.memory_space<smem>>
    %c3_10 = arith.constant 3 : index
    %c0_11 = arith.constant 0 : index
    %15 = vector.load %arg3[%c3_10, %c0_11] : memref<5x128xf32, #tpu.memory_space<vmem>>, vector<1x128xf32>
    %16 = vector.broadcast %14 : f32 to vector<1x128xf32>
    %17 = arith.mulf %16, %15 : vector<1x128xf32>
    %18 = arith.addf %13, %17 : vector<1x128xf32>
    %c4 = arith.constant 4 : index
    %c0_12 = arith.constant 0 : index
    %19 = memref.load %arg1[%c4, %c0_12] : memref<5x2xf32, #tpu.memory_space<smem>>
    %c4_13 = arith.constant 4 : index
    %c0_14 = arith.constant 0 : index
    %20 = vector.load %arg3[%c4_13, %c0_14] : memref<5x128xf32, #tpu.memory_space<vmem>>, vector<1x128xf32>
    %21 = vector.broadcast %19 : f32 to vector<1x128xf32>
    %22 = arith.mulf %21, %20 : vector<1x128xf32>
    %23 = arith.addf %18, %22 : vector<1x128xf32>
    %c0_15 = arith.constant 0 : index
    %c0_16 = arith.constant 0 : index
    %24 = memref.load %arg2[%c0_15, %c0_16] : memref<1x2xf32, #tpu.memory_space<smem>>
    %25 = vector.broadcast %24 : f32 to vector<1x128xf32>
    %26 = arith.addf %23, %25 : vector<1x128xf32>
    %c0_17 = arith.constant 0 : index
    %c0_18 = arith.constant 0 : index
    %27 = vector.load %arg4[%c0_17, %c0_18] : memref<2x128xf32, #tpu.memory_space<vmem>>, vector<1x128xf32>
    tpu.vector_store %arg4[%c0_17, %c0_18], %26 {strides = array<i32>} : memref<2x128xf32, #tpu.memory_space<vmem>>, vector<1x128xf32>,
    %c0_19 = arith.constant 0 : index
    %c1_20 = arith.constant 1 : index
    %28 = memref.load %arg1[%c0_19, %c1_20] : memref<5x2xf32, #tpu.memory_space<smem>>
    %c0_21 = arith.constant 0 : index
    %c0_22 = arith.constant 0 : index
    %29 = vector.load %arg3[%c0_21, %c0_22] : memref<5x128xf32, #tpu.memory_space<vmem>>, vector<1x128xf32>
    %30 = vector.broadcast %28 : f32 to vector<1x128xf32>
    %31 = arith.mulf %30, %29 : vector<1x128xf32>
    %c1_23 = arith.constant 1 : index
    %c1_24 = arith.constant 1 : index
    %32 = memref.load %arg1[%c1_23, %c1_24] : memref<5x2xf32, #tpu.memory_space<smem>>
    %c1_25 = arith.constant 1 : index
    %c0_26 = arith.constant 0 : index
    %33 = vector.load %arg3[%c1_25, %c0_26] : memref<5x128xf32, #tpu.memory_space<vmem>>, vector<1x128xf32>
    %34 = vector.broadcast %32 : f32 to vector<1x128xf32>
    %35 = arith.mulf %34, %33 : vector<1x128xf32>
    %36 = arith.addf %31, %35 : vector<1x128xf32>
    %c2_27 = arith.constant 2 : index
    %c1_28 = arith.constant 1 : index
    %37 = memref.load %arg1[%c2_27, %c1_28] : memref<5x2xf32, #tpu.memory_space<smem>>
    %c2_29 = arith.constant 2 : index
    %c0_30 = arith.constant 0 : index
    %38 = vector.load %arg3[%c2_29, %c0_30] : memref<5x128xf32, #tpu.memory_space<vmem>>, vector<1x128xf32>
    %39 = vector.broadcast %37 : f32 to vector<1x128xf32>
    %40 = arith.mulf %39, %38 : vector<1x128xf32>
    %41 = arith.addf %36, %40 : vector<1x128xf32>
    %c3_31 = arith.constant 3 : index
    %c1_32 = arith.constant 1 : index
    %42 = memref.load %arg1[%c3_31, %c1_32] : memref<5x2xf32, #tpu.memory_space<smem>>
    %c3_33 = arith.constant 3 : index
    %c0_34 = arith.constant 0 : index
    %43 = vector.load %arg3[%c3_33, %c0_34] : memref<5x128xf32, #tpu.memory_space<vmem>>, vector<1x128xf32>
    %44 = vector.broadcast %42 : f32 to vector<1x128xf32>
    %45 = arith.mulf %44, %43 : vector<1x128xf32>
    %46 = arith.addf %41, %45 : vector<1x128xf32>
    %c4_35 = arith.constant 4 : index
    %c1_36 = arith.constant 1 : index
    %47 = memref.load %arg1[%c4_35, %c1_36] : memref<5x2xf32, #tpu.memory_space<smem>>
    %c4_37 = arith.constant 4 : index
    %c0_38 = arith.constant 0 : index
    %48 = vector.load %arg3[%c4_37, %c0_38] : memref<5x128xf32, #tpu.memory_space<vmem>>, vector<1x128xf32>
    %49 = vector.broadcast %47 : f32 to vector<1x128xf32>
    %50 = arith.mulf %49, %48 : vector<1x128xf32>
    %51 = arith.addf %46, %50 : vector<1x128xf32>
    %c0_39 = arith.constant 0 : index
    %c1_40 = arith.constant 1 : index
    %52 = memref.load %arg2[%c0_39, %c1_40] : memref<1x2xf32, #tpu.memory_space<smem>>
    %53 = vector.broadcast %52 : f32 to vector<1x128xf32>
    %54 = arith.addf %51, %53 : vector<1x128xf32>
    %c1_41 = arith.constant 1 : index
    %c0_42 = arith.constant 0 : index
    %55 = vector.load %arg4[%c1_41, %c0_42] : memref<2x128xf32, #tpu.memory_space<vmem>>, vector<1x128xf32>
    tpu.vector_store %arg4[%c1_41, %c0_42], %54 {strides = array<i32>} : memref<2x128xf32, #tpu.memory_space<vmem>>, vector<1x128xf32>,
    return
  }
  func.func @transform_0(%arg0: i32) -> (i32, i32) {
    %c0_i32 = arith.constant 0 : i32
    %c0_i32_0 = arith.constant 0 : i32
    %c0_i32_1 = arith.constant 0 : i32
    return %c0_i32, %c0_i32_0 : i32, i32
  }
  func.func @transform_1(%arg0: i32) -> (i32, i32) {
    %c0_i32 = arith.constant 0 : i32
    %c0_i32_0 = arith.constant 0 : i32
    %c0_i32_1 = arith.constant 0 : i32
    return %c0_i32, %c0_i32_0 : i32, i32
  }
  func.func @transform_2(%arg0: i32) -> (i32, i32) {
    %c0_i32 = arith.constant 0 : i32
    %c0_i32_0 = arith.constant 0 : i32
    return %c0_i32, %arg0 : i32, i32
  }
  func.func @transform_3(%arg0: i32) -> (i32, i32) {
    %c0_i32 = arith.constant 0 : i32
    %c0_i32_0 = arith.constant 0 : i32
    return %c0_i32, %arg0 : i32, i32
  }
}

</mosaic_0001>

<bundles_post_ra>
// kernel: tpu_custom_call.1
= control target key start
LH: loop header
LB: loop body
LE: loop exit
PB: predicated region body
PF: predicated region fallthrough
CT: control target
= control target key end

     0   :  { %8 = vsyncpa [#allocation5], 0  ;;  %s834_s0 = inlined_call_operand.vmem [shape: f32[5,2], index: 0, kind: input, shape index: {}]   ;;  %s835_s1 = inlined_call_operand.vmem [shape: f32[1,2], index: 1, kind: input, shape index: {}]   ;;  %s836_s2 = inlined_call_operand.hbm [shape: f32[5,384], index: 2, kind: input, shape index: {}]   ;;  %s837_s3 = inlined_call_operand.hbm [shape: f32[2,384], index: 3, kind: output, shape index: {}]  }
   0x1   :  { %9 = vsyncpa [#allocation7], 0 }
   0x2   :  { %10 = vsyncpa [#allocation3], 0 }
   0x3   :  { %12 = vsyncpa [#allocation3 + $0x1], 0 }
   0x4   :  { %13 = vsyncpa [#allocation4], 0 }
   0x5   :  { %15 = vsyncpa [#allocation4 + $0x1], 0  ;;  %s628_s12 = smov 0   ;;  %s630_s13 = smov 0  }
   0x6   :  { %s632_s14 = smov 0   ;;  %s634_s15 = smov 0  }
   0x7 LB: > { %s649_s16 = sadd.s32 4294967295, %s602_s15   ;;  %s375_s17 = sadd.s32 4294967294, %s602_s15   ;;  %s602_s15 = sphi %s634_s15, %s858_s15   ;;  %s598_s14 = sphi %s632_s14, %s857_s14   ;;  %s594_s13 = sphi %s630_s13, %s856_s13   ;;  %s590_s12 = sphi %s628_s12, %s855_s12  }
   0x8   : > { %p83_p0 = scmp.ne.s32.totalorder %s594_s13, %s590_s12  ;;  %p838_p1 = scmp.eq.s32.totalorder %s649_s16, 0 }
   0x9   : > { %p113_p3 = scmp.eq.s32.totalorder %s375_s17, 2  ;;  %p376_p5 = scmp.ge.s32.totalorder %s602_s15, 1 }
   0xa   : > { %p658_p4 = por %p838_p1, %p83_p0  ;;  %p120_p7 = scmp.lt.s32.totalorder %s602_s15, 4 }
   0xb   : > { %p663_p6 = por %p113_p3, %p83_p0  ;;  %s133_s22 = sshll.u32 %s834_s0, 4  ;;  %s134_s22 = int_to_ptr.vmem [resolvable:$true] %s133_s22 }
   0xc   : > { %s841_s18 = scalar_select %p658_p4, 1, 0 }
   0xd   : > { %s842_s19 = scalar_select %p663_p6, 1, 0 }
   0xe   : > { %p671_p8 = pnand %p376_p5, %p120_p7  ;;  %s144_s26 = sshll.u32 %s835_s1, 4  ;;  %s145_s26 = int_to_ptr.vmem [resolvable:$true] %s144_s26 }
   0xf   : > { %s687_s28 = sadd.s32 1, %s602_s15   ;;  %s468_s30 = scalar_lea.vmem %s134_s22, 128 }
  0x10   : > { %s843_s23 = scalar_select %p671_p8, 1, 0 }
  0x11   : > { %p413_p9 = pneg %p671_p8  ;;  %s67_s29 = ssub.s32 %s602_s15, %s687_s28 }
  0x12   : > { %p469_p11 = scmp.ne.s32.totalorder %s134_s22, %s468_s30  ;;  %p476_p3 = scmp.lt.s32.totalorder %s134_s22, %s134_s22 }
  0x13   : > { %p682_p10 = pnand %p413_p9, %p838_p1  ;;  %p477_p5 = scmp.lt.s32.totalorder %s468_s30, %s468_s30 }
  0x15   : > { %p470_p12 = pneg %p682_p10  ;;  %p478_p7 = por %p477_p5, %p476_p3 }
  0x17   : > { %p471_p13 = pnand %p470_p12, %p469_p11 }
  0x19   : > { %p472_p0 = pneg %p471_p13 }
  0x1b   : > { %p479_p2 = pnand %p478_p7, %p472_p0 }
  0x1d   : > { %482 = shalt.err (!%p479_p2)
}
  0x1e   : > { %s604_s4 = smov [#allocation2]   ;;  %s483_s5 = scalar_lea.vmem %s145_s26, 16 }
  0x1f   : > { %416 = dma.vmem_to_smem (!%p682_p10), %s134_s22, 128, %s604_s4, [#allocation5]  }
  0x20   : > { %p484_p9 = scmp.ne.s32.totalorder %s145_s26, %s483_s5  ;;  %p491_p4 = scmp.lt.s32.totalorder %s145_s26, %s145_s26 }
  0x21   : > { %p492_p8 = scmp.lt.s32.totalorder %s483_s5, %s483_s5 }
  0x22   : > { %p486_p1 = pnand %p484_p9, %p470_p12 }
  0x23   : > { %p493_p11 = por %p492_p8, %p491_p4 }
  0x24   : > { %p487_p6 = pneg %p486_p1 }
  0x26   : > { %p494_p13 = pnand %p493_p11, %p487_p6 }
  0x28   : > { %497 = shalt.err (!%p494_p13)
}
  0x29   : > { %s605_s6 = smov [#allocation6]   ;;  %p68_p2 = scmp.eq.s32.totalorder %s67_s29, 0 }
  0x2a   : > { %419 = dma.vmem_to_smem (!%p682_p10), %s145_s26, 16, %s605_s6, [#allocation7]  }
  0x2b   : > { %s70_s7 = sadd.s32 1, %s598_s14  ;;  %p77_p1 = scmp.ne.s32.totalorder %s598_s14, %s594_s13 }
  0x2c   : > { %p78_p12 = scmp.eq.s32.totalorder %s602_s15, 0  ;;  %p845_p6 = scmp.eq.s32.totalorder %s649_s16, 2 }
  0x2d   : > { %s702_s8 = scalar_select %p68_p2, %s598_s14, %s70_s7  }
  0x2e   : > { %p79_p4 = por %p78_p12, %p77_p1  ;;  %p706_p8 = por %p845_p6, %p77_p1 }
  0x2f   : > { %p430_p0 = scmp.lt.s32.totalorder %s602_s15, 3  ;;  %s155_s10 = sand.u32 1, %s598_s14  }
  0x30   : > { %s380_s11 = sshll.u32 %s155_s10, 3  ;;  %s381_s17 = sshll.u32 %s602_s15, 7 }
  0x31   : > { %s716_s22 = scalar_lea.hbm %s836_s2, %s381_s17  ;;  %s159_s24 = scalar_lea.vmem [#allocation8], %s380_s11 }
  0x32   : > { %s166_s25 = sshll.u32 %s159_s24, 4  ;;  %p720_p10 = pnand %p430_p0, %p79_p4  ;;  %s718_s25 = int_to_ptr.vmem [resolvable:$true] %s166_s25 }
  0x33   : > { %s156_s27 = scalar_lea.sflag [#allocation3], %s155_s10  ;;  %s498_s29 = scalar_lea.hbm %s716_s22, 128 }
  0x34   : > { %p499_p3 = scmp.ne.s32.totalorder %s716_s22, %s498_s29  ;;  %p500_p5 = pneg %p720_p10 }
  0x35   : > { %s503_s5 = scalar_lea.hbm %s836_s2, 384  ;;  %p504_p11 = scmp.lt.u32.totalorder %s716_s22, %s836_s2 }
  0x36   : > { %p501_p7 = pnand %p500_p5, %p499_p3  ;;  %p505_p13 = scmp.lt.u32.totalorder %s503_s5, %s498_s29 }
  0x37   : > { %p507_p1 = scmp.lt.u32.totalorder %s498_s29, %s716_s22 }
  0x38   : > { %p502_p9 = pneg %p501_p7  ;;  %p506_p2 = por %p505_p13, %p504_p11 }
  0x3a   : > { %p508_p12 = por %p507_p1, %p506_p2 }
  0x3c   : > { %p509_p4 = pnand %p508_p12, %p502_p9 }
  0x3e   : > { %512 = shalt.err (!%p509_p4)
}
  0x3f   : > { %s513_s10 = scalar_lea.vmem %s718_s25, 128  ;;  %s606_s11 = smov [#allocation8]  }
  0x40   : > { %p514_p6 = scmp.ne.s32.totalorder %s718_s25, %s513_s10  ;;  %s518_s17 = sshll.u32 %s606_s11, 4  ;;  %s519_s17 = int_to_ptr.vmem [resolvable:$false] %s518_s17 }
  0x41   : > { %s520_s20 = scalar_lea.vmem %s519_s17, 256  ;;  %p521_p7 = scmp.lt.s32.totalorder %s718_s25, %s519_s17 }
  0x42   : > { %p516_p0 = pnand %p514_p6, %p500_p5  ;;  %p522_p11 = scmp.lt.s32.totalorder %s520_s20, %s513_s10 }
  0x44   : > { %p517_p3 = pneg %p516_p0  ;;  %p523_p13 = por %p522_p11, %p521_p7 }
  0x46   : > { %p524_p2 = pnand %p523_p13, %p517_p3 }
  0x48   : > { %527 = shalt.err (!%p524_p2)
}
  0x49   : > { %423 = dma.hbm_to_vmem [thread:$0]  (!%p720_p10), %s716_s22, 128, %s718_s25, %s156_s27  }
  0x4a   : > { %p848_p9 = scmp.ne.s32.totalorder %s843_s23, 0 }
  0x4b   : > { %p849_p5 = scmp.eq.s32.totalorder (!%p848_p9), %s649_s16, 0 }
  0x4c   : > { %175 = sbr.rel (%p848_p9) target bundleno = 129 (0x81), region = 32 }
  0x53   : > { %573 = dma.done.wait (%p849_p5), [#allocation5], 128   ;;  %p850_p1 = pmov %p849_p5 }
  0x55   : > { %575 = vsyncadd (%p850_p1), [#allocation5], 4294967168  ;;  %p851_p12 = pmov %p850_p1 }
  0x56   : > { %p852_p4 = pmov %p850_p1 }
  0x57   : > { %577 = dma.done.wait (%p851_p12), [#allocation7], 16  }
  0x58   : > { %579 = vsyncadd (%p852_p4), [#allocation7], 4294967280  ;;  %s760_s21 = sand.u32 1, %s594_s13   ;;  %p853_p10 = scmp.ne.s32.totalorder %s841_s18, 0 }
  0x59   : > { %s385_s23 = sshll.u32 %s760_s21, 3  ;;  %s186_s22 = scalar_lea.sflag [#allocation3], %s760_s21 }
  0x5a   : > { %s764_s24 = scalar_lea.vmem [#allocation8], %s385_s23 }
  0x5b   : > { %581 = dma.done.wait (%p853_p10), %s186_s22, 128  }
  0x5c   : > { %583 = vsyncadd (%p853_p10), %s186_s22, 4294967168 }
  0x5d   : > { %194 = sfence }
  0x5e   : > { %s213_s25 = sld [smem:[#allocation2]]  ;;  %v214_v0 = vld [vmem:[%s764_s24] sm:$0x1]  ;;  %v218_v1 = vld [vmem:[%s764_s24 + $0x1] sm:$0x1]  ;;  %s391_s5 = sld [smem:[#allocation2 + $0x1]] }
  0x5f   : > { %s387_s26 = sld [smem:[#allocation2 + $0x80]]  ;;  %v223_v3 = vld [vmem:[%s764_s24 + $0x2] sm:$0x1]  ;;  %s392_s18 = sld [smem:[#allocation2 + $0x81]]  ;;  %v228_v6 = vld [vmem:[%s764_s24 + $0x3] sm:$0x1] }
  0x60   : > { %s388_s27 = sld [smem:[#allocation2 + $0x100]]  ;;  %s393_s6 = sld [smem:[#allocation2 + $0x101]]  ;;  %v233_v10 = vld [vmem:[%s764_s24 + $0x4] sm:$0x1]  ;;  %v242_v13 = vld [vmem:[%s764_s24] sm:$0x1] }
  0x61   : > { %s389_s29 = sld [smem:[#allocation2 + $0x180]]  ;;  %s394_s7 = sld [smem:[#allocation2 + $0x181]]  ;;  %v246_v16 = vld [vmem:[%s764_s24 + $0x1] sm:$0x1]  ;;  %v251_v17 = vld [vmem:[%s764_s24 + $0x2] sm:$0x1] }
  0x62   : > { %s390_s30 = sld [smem:[#allocation2 + $0x200]]  ;;  %s776_s10 = sld [smem:[#allocation2 + $0x201]]  ;;  %v256_v24 = vld [vmem:[%s764_s24 + $0x3] sm:$0x1]  ;;  %v261_v29 = vld [vmem:[%s764_s24 + $0x4] sm:$0x1] }
  0x63   : > { %s772_s4 = sld [smem:[#allocation6]]  ;;  %s396_s11 = sld [smem:[#allocation6 + $0x1]] }
  0x64   : > { %v215_v2 = vstv %s213_s25  ;;  %v243_v19 = vstv %s391_s5  ;;  %s386_s17 = sshll.u32 %s760_s21, 1  ;;  %s398_s22 = sshll.u32 %s649_s16, 5 }
  0x65   : > { %v216_v4 = vmul.f32 %v215_v2, %v214_v0  ;;  %v219_v5 = vstv %s387_s26  ;;  %v244_v21 = vmul.f32 %v243_v19, %v242_v13  ;;  %v247_v22 = vstv %s392_s18  ;;  %s212_s20 = scalar_lea.vmem [#allocation9], %s386_s17  ;;  %s793_s26 = scalar_lea.hbm %s837_s3, %s398_s22 }
  0x66   : > { %v220_v7 = vmul.f32 %v219_v5, %v218_v1  ;;  %v224_v8 = vstv %s388_s27  ;;  %v252_v23 = vstv %s393_s6  ;;  %v248_v25 = vmul.f32 %v247_v22, %v246_v16  ;;  %s283_s23 = sshll.u32 %s212_s20, 4  ;;  %s270_s27 = scalar_lea.sflag [#allocation4], %s760_s21  ;;  %s788_s23 = int_to_ptr.vmem [resolvable:$true] %s283_s23 }
  0x67   : > { %v229_v9 = vstv %s389_s29  ;;  %v225_v11 = vmul.f32 %v224_v8, %v223_v3  ;;  %v253_v26 = vmul.f32 %v252_v23, %v251_v17  ;;  %v257_v27 = vstv %s394_s7  ;;  %s528_s29 = scalar_lea.vmem %s788_s23, 32  ;;  %s607_s16 = smov [#allocation9]  }
  0x68   : > { %v234_v12 = vstv %s390_s30  ;;  %v221_v14 = vadd.f32 %v220_v7, %v216_v4  ;;  %v230_v15 = vmul.f32 %v229_v9, %v228_v6  ;;  %v262_v30 = vstv %s776_s10  ;;  %p529_p6 = scmp.ne.s32.totalorder %s788_s23, %s528_s29  ;;  %s532_s30 = sshll.u32 %s607_s16, 4  ;;  %s533_s30 = int_to_ptr.vmem [resolvable:$false] %s532_s30 }
  0x69   : > { %v235_v18 = vmul.f32 %v234_v12, %v233_v10  ;;  %v238_v31 = vstv %s772_s4  ;;  %v249_v32 = vadd.f32 %v248_v25, %v244_v21  ;;  %v258_v33 = vmul.f32 %v257_v27, %v256_v24  ;;  %s534_s4 = scalar_lea.vmem %s533_s30, 64  ;;  %p535_p7 = scmp.lt.s32.totalorder %s788_s23, %s533_s30 }
  0x6a   : > { %v226_v20 = vadd.f32 %v225_v11, %v221_v14  ;;  %v263_v36 = vmul.f32 %v262_v30, %v261_v29  ;;  %v266_v39 = vstv %s396_s11  ;;  %p530_p0 = pnand %p529_p6, %p706_p8  ;;  %p536_p11 = scmp.lt.s32.totalorder %s534_s4, %s528_s29 }
  0x6b   : > { %v254_v35 = vadd.f32 %v253_v26, %v249_v32 }
  0x6c   : > { %v231_v28 = vadd.f32 %v230_v15, %v226_v20  ;;  %p531_p3 = pneg %p530_p0  ;;  %p537_p13 = por %p536_p11, %p535_p7 }
  0x6d   : > { %v259_v38 = vadd.f32 %v258_v33, %v254_v35 }
  0x6e   : > { %v236_v34 = vadd.f32 %v235_v18, %v231_v28  ;;  %p538_p2 = pnand %p537_p13, %p531_p3 }
  0x6f   : > { %v264_v40 = vadd.f32 %v263_v36, %v259_v38 }
  0x70   : > { %v239_v37 = vadd.f32 %v238_v31, %v236_v34 }
  0x71   : > { %v267_v41 = vadd.f32 %v266_v39, %v264_v40 }
  0x72   : > { %240 = vst [vmem:[%s212_s20] sm:$0x1] %v239_v37 }
  0x73   : > { %268 = vst [vmem:[%s212_s20 + $0x1] sm:$0x1] %v267_v41 }
  0x74   : > { %541 = shalt.err (!%p538_p2)
}
  0x75   : > { %s542_s21 = scalar_lea.hbm %s793_s26, 32  ;;  %s546_s6 = scalar_lea.hbm %s837_s3, 96 }
  0x76   : > { %p543_p9 = scmp.ne.s32.totalorder %s793_s26, %s542_s21  ;;  %p547_p12 = scmp.lt.u32.totalorder %s793_s26, %s837_s3 }
  0x77   : > { %p548_p4 = scmp.lt.u32.totalorder %s546_s6, %s542_s21  ;;  %p550_p6 = scmp.lt.u32.totalorder %s542_s21, %s793_s26 }
  0x78   : > { %p544_p5 = pnand %p543_p9, %p706_p8 }
  0x79   : > { %p549_p10 = por %p548_p4, %p547_p12 }
  0x7a   : > { %p545_p1 = pneg %p544_p5 }
  0x7b   : > { %p551_p0 = por %p550_p6, %p549_p10 }
  0x7d   : > { %p552_p3 = pnand %p551_p0, %p545_p1 }
  0x7f   : > { %555 = shalt.err (!%p552_p3)
}
  0x80   : > { %411 = dma.vmem_to_hbm [thread:$0]  (%p706_p8), %s788_s23, 32, %s793_s26, %s270_s27  }
  0x81 PF: > { %p433_p7 = scmp.ge.s32.totalorder %s602_s15, 2  ;;  %s295_s11 = sand.u32 1, %s590_s12  }
  0x82   : > { %p854_p11 = scmp.ne.s32.totalorder %s842_s19, 0  ;;  %s296_s17 = scalar_lea.sflag [#allocation4], %s295_s11 }
  0x84   : > { %p425_p13 = pnand %p433_p7, %p854_p11 }
  0x86   : > { %585 = dma.done.wait (!%p425_p13), %s296_s17, 32  }
  0x87   : > { %587 = vsyncadd (!%p425_p13), %s296_s17, 4294967264  ;;  %p18_p2 = scmp.ge.s32.totalorder %s687_s28, 5   ;;  %s855_s12 = smov %s594_s13 }
  0x88   : > { %s856_s13 = smov %s598_s14  ;;  %s857_s14 = smov %s702_s8 }
  0x89   : > { %s858_s15 = smov %s687_s28  ;;  %20 = sbr.rel (!%p18_p2) target bundleno = 7 (0x7), region = 86 }
  0x90   :  { %301 = vsyncpa [#allocation3], 1 }
  0x91   :  { %303 = vsyncpa [#allocation3 + $0x1], 1 }
  0x92   :  { %304 = vsyncpa [#allocation4], 1 }
  0x93   :  { %306 = vsyncpa [#allocation4 + $0x1], 1 }
  0x94   :  { %307 = vsyncpa [#allocation5], 1 }
  0x95   :  { %309 = vsyncpa [#allocation5 + $0x1], 1 }
  0x96   :  { %310 = vsyncpa [#allocation7], 1 }

</bundles_post_ra>
